<compile_context>
chip_gen: v7x
topology: tpu7x:2x2x1
jax: 0.10.0
libtpu: 0.0.40
codegen_flags: <defaults>
</compile_context>

<pallas_src>
import functools

import jax
import jax.numpy as jnp
import numpy as np
from jax.experimental import pallas as pl
from jax.experimental.pallas import tpu as pltpu


def _round_up(x: int, m: int) -> int:
    return ((x + m - 1) // m) * m


# -----------------------------------------------------------------------------
# Pallas kernel: fused encoder + decoder MLP (BN already folded into weights)
# -----------------------------------------------------------------------------
def _autoencoder_kernel(
    x_ref,
    w1_ref, b1_ref,   # encoder L1 (Linear+BN folded) + ReLU
    w2_ref, b2_ref,   # encoder L2 (Linear+BN folded) + ReLU
    w3_ref, b3_ref,   # encoder -> latent (Linear) + ReLU
    w4_ref, b4_ref,   # decoder L1 (Linear+BN folded) + ReLU
    w5_ref, b5_ref,   # decoder L2 (Linear+BN folded) + ReLU
    w6_ref, b6_ref,   # decoder output (Linear, no activation)
    out_ref,
):
    def dense(h, w_ref, b_ref, relu):
        # h is bf16, weights bf16, accumulate in f32 on the MXU; bias/ReLU
        # epilogue in f32 (VPU-safe on v5e too), then drop back to bf16 so the
        # inter-layer activation held in VMEM/vregs is half-width.
        acc = jnp.dot(h, w_ref[...], preferred_element_type=jnp.float32)
        acc = acc + b_ref[...]
        if relu:
            return jnp.maximum(acc, 0.0).astype(jnp.bfloat16)
        return acc  # final layer: keep f32 for the output store

    h = x_ref[...]                       # bf16 activations
    # ---- Encoder ----
    h = dense(h, w1_ref, b1_ref, True)
    h = dense(h, w2_ref, b2_ref, True)
    h = dense(h, w3_ref, b3_ref, True)   # latent (padded to 128 lanes)
    # ---- Decoder ----
    h = dense(h, w4_ref, b4_ref, True)
    h = dense(h, w5_ref, b5_ref, True)
    h = dense(h, w6_ref, b6_ref, False)  # no final activation (matches module)
    out_ref[...] = h.astype(out_ref.dtype)


def _resident_spec(shape):
    """Full-array, grid-invariant, single-buffered BlockSpec."""
    zeros = (0,) * len(shape)
    index_map = lambda i, _z=zeros: _z       # safe closure, no late binding
    try:
        # Constant index_map => a second buffer would never prefetch anything
        # new; single-buffering halves the resident-weight VMEM footprint.
        return pl.BlockSpec(shape, index_map, pipeline_mode=pl.Buffered(1))
    except TypeError:  # older BlockSpec signature without pipeline_mode
        return pl.BlockSpec(shape, index_map)


def _pick_bm(B: int, block_m: int) -> int:
    """Batch-tile selector: MXU-friendly, low pad waste, >=2 steps for v7x."""
    if B <= 128:
        # Tiny batch: one (ragged) tile, 16-sublane aligned for bf16 packing.
        return max(16, _round_up(B, 16))
    bm = min(block_m, _round_up(B, 128))
    if B >= 256:
        # v7x megacore / pipeline overlap: make sure grid has >= 2 steps and a
        # batch like 260 doesn't get one half-empty 384/512-row tile.
        bm = min(bm, _round_up(pl.cdiv(B, 2), 128))
    return bm


# -----------------------------------------------------------------------------
# Wrapper
# -----------------------------------------------------------------------------
def autoencoder_forward(x, prepared, *, n_features, num_classes, block_m=512):
    """x: (B, n_features, num_classes) -> (B, n_features, num_classes)."""
    B = x.shape[0]
    d_in = n_features * num_classes
    d_in_p = prepared[-1].shape[-1]          # lane-padded output width (b6)

    # bf16 activations into the kernel: halves input HBM traffic and removes a
    # per-tile VPU cast.  (One fused reshape+convert pass in the wrapper.)
    x2d = x.reshape(B, d_in).astype(jnp.bfloat16)

    bm = _pick_bm(B, block_m)
    grid = (pl.cdiv(B, bm),)                 # ragged last tile handled by Pallas

    # Input block uses the true (unpadded) d_in as a full-dim last axis; only
    # the output is 128-lane padded so the final stores are lane-dense.
    x_spec = pl.BlockSpec((bm, d_in), lambda i: (i, 0))
    out_spec = pl.BlockSpec((bm, d_in_p), lambda i: (i, 0))
    param_specs = [_resident_spec(p.shape) for p in prepared]

    # ---- VMEM budget / cost bookkeeping ------------------------------------
    param_bytes = sum(int(np.prod(p.shape)) * p.dtype.itemsize for p in prepared)
    io_tile_bytes = 2 * bm * d_in * 2 + 2 * bm * d_in_p * 4   # double-buffered
    widths = [prepared[2 * i].shape[1] for i in range(6)]      # layer outputs
    act_bytes = bm * max(widths) * 4 * 3                       # f32 acc headroom
    vmem_est = 2 * param_bytes + io_tile_bytes + act_bytes     # 2x: spec fallback
    vmem_limit = int(min(110 << 20, max(32 << 20, int(vmem_est * 1.5) + (4 << 20))))

    flops = 2 * B * sum(int(prepared[2 * i].shape[0]) * int(prepared[2 * i].shape[1])
                        for i in range(6))
    bytes_accessed = x2d.size * 2 + B * d_in_p * 4 + param_bytes

    out2d = pl.pallas_call(
        _autoencoder_kernel,
        out_shape=jax.ShapeDtypeStruct((B, d_in_p), jnp.float32),
        grid_spec=pltpu.PrefetchScalarGridSpec(
            num_scalar_prefetch=0,
            grid=grid,
            in_specs=[x_spec] + param_specs,
            out_specs=out_spec,
        ),
        # "parallel" lets a multi-step batch grid shard across the 2 TCs on v7x.
        compiler_params=pltpu.CompilerParams(
            dimension_semantics=("parallel",),
            vmem_limit_bytes=vmem_limit,
        ),
        cost_estimate=pl.CostEstimate(
            flops=flops, transcendentals=0, bytes_accessed=int(bytes_accessed)),
    )(x2d, *prepared)

    return out2d[:, :d_in].reshape(B, n_features, num_classes)


# -----------------------------------------------------------------------------
# Raw (torch-like) parameter construction and wrapper-side fold/pad/cast
# -----------------------------------------------------------------------------
def init_raw_params(key, *, n_features, num_classes, hidden_layer_sizes,
                    latent_dim):
    """Synthetic params mirroring the PyTorch module's shapes (eval mode)."""
    d_in = n_features * num_classes
    enc = [h * num_classes for h in hidden_layer_sizes]   # e.g. [384, 192]
    dec = list(reversed(enc))                             # e.g. [192, 384]
    keys = iter(jax.random.split(key, 64))
    raw = {}

    def linear(name, fan_in, fan_out):
        # PyTorch Linear stores W as (out, in); pre-transposed here to (in, out).
        bound = 1.0 / np.sqrt(fan_in)
        raw[name + "_w"] = jax.random.uniform(
            next(keys), (fan_in, fan_out), minval=-bound, maxval=bound,
            dtype=jnp.float32)
        raw[name + "_b"] = jax.random.uniform(
            next(keys), (1, fan_out), minval=-bound, maxval=bound,
            dtype=jnp.float32)

    def bn(name, size):
        raw[name + "_gamma"] = 1.0 + 0.1 * jax.random.normal(
            next(keys), (1, size), jnp.float32)
        raw[name + "_beta"] = 0.1 * jax.random.normal(
            next(keys), (1, size), jnp.float32)
        raw[name + "_mean"] = 0.1 * jax.random.normal(
            next(keys), (1, size), jnp.float32)
        raw[name + "_var"] = jnp.abs(
            1.0 + 0.1 * jax.random.normal(next(keys), (1, size), jnp.float32))

    linear("enc1", d_in, enc[0]); bn("enc1", enc[0])
    linear("enc2", enc[0], enc[1]); bn("enc2", enc[1])
    linear("enc3", enc[1], latent_dim)
    linear("dec1", latent_dim, dec[0]); bn("dec1", dec[0])
    linear("dec2", dec[0], dec[1]); bn("dec2", dec[1])
    linear("dec3", dec[1], d_in)
    return raw


def prepare_params(raw, *, n_features, num_classes, latent_dim,
                   weights_dtype=jnp.bfloat16, eps=1e-5):
    """One-time fold of BN into the Linears, lane padding, and weight cast."""
    d_in = n_features * num_classes
    d_in_p = _round_up(d_in, 128)
    lat_p = _round_up(latent_dim, 128)

    def fold(name):
        w, b = raw[name + "_w"], raw[name + "_b"]
        scale = raw[name + "_gamma"] / jnp.sqrt(raw[name + "_var"] + eps)
        shift = raw[name + "_beta"] - raw[name + "_mean"] * scale
        return w * scale, b * scale + shift

    w1, b1 = fold("enc1")
    w2, b2 = fold("enc2")
    w3, b3 = raw["enc3_w"], raw["enc3_b"]
    w4, b4 = fold("dec1")
    w5, b5 = fold("dec2")
    w6, b6 = raw["dec3_w"], raw["dec3_b"]

    # Zero-pad only the latent boundary (cols of w3 / rows of w4) and the
    # output boundary (cols of w6 + b6) so the latent matmuls and the final
    # stores are lane-dense.  The input K dim stays the true d_in (the kernel
    # uses a full-dim block there), so no padded copy of x is ever made.
    w3 = jnp.pad(w3, ((0, 0), (0, lat_p - latent_dim)))
    b3 = jnp.pad(b3, ((0, 0), (0, lat_p - latent_dim)))
    w4 = jnp.pad(w4, ((0, lat_p - latent_dim), (0, 0)))
    w6 = jnp.pad(w6, ((0, 0), (0, d_in_p - d_in)))
    b6 = jnp.pad(b6, ((0, 0), (0, d_in_p - d_in)))

    weights = [w.astype(weights_dtype) for w in (w1, w2, w3, w4, w5, w6)]
    biases = [b.astype(jnp.float32) for b in (b1, b2, b3, b4, b5, b6)]
    prepared = []
    for w, b in zip(weights, biases):
        prepared.extend([w, b])
    return tuple(prepared)


# -----------------------------------------------------------------------------
# References
# -----------------------------------------------------------------------------
def reference_forward_raw(x, raw, *, n_features, num_classes, eps=1e-5):
    """Pure-JAX f32 eval-mode semantics of the PyTorch module."""
    B = x.shape[0]

    def lin(h, name):
        return h @ raw[name + "_w"] + raw[name + "_b"]

    def bn(h, name):
        g, b = raw[name + "_gamma"], raw[name + "_beta"]
        m, v = raw[name + "_mean"], raw[name + "_var"]
        return (h - m) / jnp.sqrt(v + eps) * g + b

    h = x.reshape(B, n_features * num_classes)
    h = jnp.maximum(bn(lin(h, "enc1"), "enc1"), 0.0)
    h = jnp.maximum(bn(lin(h, "enc2"), "enc2"), 0.0)
    z = jnp.maximum(lin(h, "enc3"), 0.0)
    h = jnp.maximum(bn(lin(z, "dec1"), "dec1"), 0.0)
    h = jnp.maximum(bn(lin(h, "dec2"), "dec2"), 0.0)
    out = lin(h, "dec3")
    return out.reshape(B, n_features, num_classes)


def reference_forward_matched(x, prepared, *, n_features, num_classes):
    """Same folded/padded/bf16 math as the kernel, in plain jnp."""
    B = x.shape[0]
    d_in = n_features * num_classes
    w1, b1, w2, b2, w3, b3, w4, b4, w5, b5, w6, b6 = prepared

    def dense(h, w, b, relu):
        y = jnp.dot(h, w, preferred_element_type=jnp.float32) + b
        if relu:
            return jnp.maximum(y, 0.0).astype(jnp.bfloat16)
        return y

    h = x.reshape(B, d_in).astype(jnp.bfloat16)
    h = dense(h, w1, b1, True)
    h = dense(h, w2, b2, True)
    h = dense(h, w3, b3, True)
    h = dense(h, w4, b4, True)
    h = dense(h, w5, b5, True)
    h = dense(h, w6, b6, False)
    return h[:, :d_in].reshape(B, n_features, num_classes)


if __name__ == "__main__":
    # Small, module-consistent shapes.
    n_features = 16
    num_classes = 3
    hidden_layer_sizes = [128, 64]   # -> encoder hidden [384, 192]
    latent_dim = 2
    batch = 8

    key = jax.random.PRNGKey(0)
    k_x, k_p = jax.random.split(key)

    x = jax.random.normal(k_x, (batch, n_features, num_classes),
                          dtype=jnp.float32)
    raw = init_raw_params(k_p, n_features=n_features, num_classes=num_classes,
                          hidden_layer_sizes=hidden_layer_sizes,
                          latent_dim=latent_dim)
    prepared = prepare_params(raw, n_features=n_features,
                              num_classes=num_classes, latent_dim=latent_dim,
                              weights_dtype=jnp.bfloat16)

    fwd = jax.jit(functools.partial(autoencoder_forward, n_features=n_features,
                                    num_classes=num_classes, block_m=512))
    out = jax.block_until_ready(fwd(x, prepared))
    assert out.shape == (batch, n_features, num_classes)

    # 1) Kernel mechanics: must match the identically-folded/padded/bf16 math.
    ref_matched = jax.block_until_ready(
        reference_forward_matched(x, prepared, n_features=n_features,
                                  num_classes=num_classes))
    np.testing.assert_allclose(np.asarray(out), np.asarray(ref_matched),
                               rtol=2e-3, atol=2e-3)

    # 2) Module semantics: must match the f32 eval-mode PyTorch forward up to
    #    bf16 weight/activation quantization.
    ref_raw = jax.block_until_ready(
        reference_forward_raw(x, raw, n_features=n_features,
                              num_classes=num_classes))
    np.testing.assert_allclose(np.asarray(out), np.asarray(ref_raw),
                               rtol=5e-2, atol=5e-2)

    print("KERNEL_OK")
</pallas_src>

<mosaic_0001>
module attributes {stable_mosaic.version = 11 : i64} {
  func.func @_autoencoder_kernel(%arg0: i32, %arg1: memref<16x48xbf16, #tpu.memory_space<vmem>>, %arg2: memref<48x384xbf16, #tpu.memory_space<vmem>>, %arg3: memref<1x384xf32, #tpu.memory_space<vmem>>, %arg4: memref<384x192xbf16, #tpu.memory_space<vmem>>, %arg5: memref<1x192xf32, #tpu.memory_space<vmem>>, %arg6: memref<192x128xbf16, #tpu.memory_space<vmem>>, %arg7: memref<1x128xf32, #tpu.memory_space<vmem>>, %arg8: memref<128x192xbf16, #tpu.memory_space<vmem>>, %arg9: memref<1x192xf32, #tpu.memory_space<vmem>>, %arg10: memref<192x384xbf16, #tpu.memory_space<vmem>>, %arg11: memref<1x384xf32, #tpu.memory_space<vmem>>, %arg12: memref<384x128xbf16, #tpu.memory_space<vmem>>, %arg13: memref<1x128xf32, #tpu.memory_space<vmem>>, %arg14: memref<16x128xf32, #tpu.memory_space<vmem>>) attributes {dimension_semantics = [#tpu.dimension_semantics<parallel>], iteration_bounds = array<i64: 1>, scalar_prefetch = 0 : i64, scratch_operands = 0 : i64, tpu.core_type = #tpu.core_type<tc>, window_params = [{transform_indices = @transform_0, window_bounds = array<i64: 16, 48>}, {pipeline_mode = #tpu.pipeline_mode<synchronous>, transform_indices = @transform_1, window_bounds = array<i64: 48, 384>}, {pipeline_mode = #tpu.pipeline_mode<synchronous>, transform_indices = @transform_2, window_bounds = array<i64: 1, 384>}, {pipeline_mode = #tpu.pipeline_mode<synchronous>, transform_indices = @transform_3, window_bounds = array<i64: 384, 192>}, {pipeline_mode = #tpu.pipeline_mode<synchronous>, transform_indices = @transform_4, window_bounds = array<i64: 1, 192>}, {pipeline_mode = #tpu.pipeline_mode<synchronous>, transform_indices = @transform_5, window_bounds = array<i64: 192, 128>}, {pipeline_mode = #tpu.pipeline_mode<synchronous>, transform_indices = @transform_6, window_bounds = array<i64: 1, 128>}, {pipeline_mode = #tpu.pipeline_mode<synchronous>, transform_indices = @transform_7, window_bounds = array<i64: 128, 192>}, {pipeline_mode = #tpu.pipeline_mode<synchronous>, transform_indices = @transform_8, window_bounds = array<i64: 1, 192>}, {pipeline_mode = #tpu.pipeline_mode<synchronous>, transform_indices = @transform_9, window_bounds = array<i64: 192, 384>}, {pipeline_mode = #tpu.pipeline_mode<synchronous>, transform_indices = @transform_10, window_bounds = array<i64: 1, 384>}, {pipeline_mode = #tpu.pipeline_mode<synchronous>, transform_indices = @transform_11, window_bounds = array<i64: 384, 128>}, {pipeline_mode = #tpu.pipeline_mode<synchronous>, transform_indices = @transform_12, window_bounds = array<i64: 1, 128>}, {transform_indices = @transform_13, window_bounds = array<i64: 16, 128>}]} {
    %c0 = arith.constant 0 : index
    %c0_0 = arith.constant 0 : index
    %0 = vector.load %arg1[%c0, %c0_0] : memref<16x48xbf16, #tpu.memory_space<vmem>>, vector<16x48xbf16>
    %c0_1 = arith.constant 0 : index
    %c0_2 = arith.constant 0 : index
    %1 = vector.load %arg2[%c0_1, %c0_2] : memref<48x384xbf16, #tpu.memory_space<vmem>>, vector<48x384xbf16>
    %cst = arith.constant dense<0.000000e+00> : vector<16x384xf32>
    %2 = tpu.matmul %0, %1, %cst {dimension_numbers = #tpu.dot_dimension_numbers<[1], [0], [0], [1], [0, 0, 1, 1], [], []>} : vector<16x48xbf16>, vector<48x384xbf16>, vector<16x384xf32> -> vector<16x384xf32>
    %c0_3 = arith.constant 0 : index
    %c0_4 = arith.constant 0 : index
    %3 = vector.load %arg3[%c0_3, %c0_4] : memref<1x384xf32, #tpu.memory_space<vmem>>, vector<1x384xf32>
    %4 = vector.broadcast %3 : vector<1x384xf32> to vector<16x384xf32>
    %5 = arith.addf %2, %4 : vector<16x384xf32>
    %cst_5 = arith.constant 0.000000e+00 : f32
    %6 = vector.broadcast %cst_5 : f32 to vector<16x384xf32>
    %7 = arith.maximumf %5, %6 : vector<16x384xf32>
    %8 = arith.truncf %7 : vector<16x384xf32> to vector<16x384xbf16>
    %c0_6 = arith.constant 0 : index
    %c0_7 = arith.constant 0 : index
    %9 = vector.load %arg4[%c0_6, %c0_7] : memref<384x192xbf16, #tpu.memory_space<vmem>>, vector<384x192xbf16>
    %cst_8 = arith.constant dense<0.000000e+00> : vector<16x192xf32>
    %10 = tpu.matmul %8, %9, %cst_8 {dimension_numbers = #tpu.dot_dimension_numbers<[1], [0], [0], [1], [0, 0, 1, 1], [], []>} : vector<16x384xbf16>, vector<384x192xbf16>, vector<16x192xf32> -> vector<16x192xf32>
    %c0_9 = arith.constant 0 : index
    %c0_10 = arith.constant 0 : index
    %11 = vector.load %arg5[%c0_9, %c0_10] : memref<1x192xf32, #tpu.memory_space<vmem>>, vector<1x192xf32>
    %12 = vector.broadcast %11 : vector<1x192xf32> to vector<16x192xf32>
    %13 = arith.addf %10, %12 : vector<16x192xf32>
    %cst_11 = arith.constant 0.000000e+00 : f32
    %14 = vector.broadcast %cst_11 : f32 to vector<16x192xf32>
    %15 = arith.maximumf %13, %14 : vector<16x192xf32>
    %16 = arith.truncf %15 : vector<16x192xf32> to vector<16x192xbf16>
    %c0_12 = arith.constant 0 : index
    %c0_13 = arith.constant 0 : index
    %17 = vector.load %arg6[%c0_12, %c0_13] : memref<192x128xbf16, #tpu.memory_space<vmem>>, vector<192x128xbf16>
    %cst_14 = arith.constant dense<0.000000e+00> : vector<16x128xf32>
    %18 = tpu.matmul %16, %17, %cst_14 {dimension_numbers = #tpu.dot_dimension_numbers<[1], [0], [0], [1], [0, 0, 1, 1], [], []>} : vector<16x192xbf16>, vector<192x128xbf16>, vector<16x128xf32> -> vector<16x128xf32>
    %c0_15 = arith.constant 0 : index
    %c0_16 = arith.constant 0 : index
    %19 = vector.load %arg7[%c0_15, %c0_16] : memref<1x128xf32, #tpu.memory_space<vmem>>, vector<1x128xf32>
    %20 = vector.broadcast %19 : vector<1x128xf32> to vector<16x128xf32>
    %21 = arith.addf %18, %20 : vector<16x128xf32>
    %cst_17 = arith.constant 0.000000e+00 : f32
    %22 = vector.broadcast %cst_17 : f32 to vector<16x128xf32>
    %23 = arith.maximumf %21, %22 : vector<16x128xf32>
    %24 = arith.truncf %23 : vector<16x128xf32> to vector<16x128xbf16>
    %c0_18 = arith.constant 0 : index
    %c0_19 = arith.constant 0 : index
    %25 = vector.load %arg8[%c0_18, %c0_19] : memref<128x192xbf16, #tpu.memory_space<vmem>>, vector<128x192xbf16>
    %cst_20 = arith.constant dense<0.000000e+00> : vector<16x192xf32>
    %26 = tpu.matmul %24, %25, %cst_20 {dimension_numbers = #tpu.dot_dimension_numbers<[1], [0], [0], [1], [0, 0, 1, 1], [], []>} : vector<16x128xbf16>, vector<128x192xbf16>, vector<16x192xf32> -> vector<16x192xf32>
    %c0_21 = arith.constant 0 : index
    %c0_22 = arith.constant 0 : index
    %27 = vector.load %arg9[%c0_21, %c0_22] : memref<1x192xf32, #tpu.memory_space<vmem>>, vector<1x192xf32>
    %28 = vector.broadcast %27 : vector<1x192xf32> to vector<16x192xf32>
    %29 = arith.addf %26, %28 : vector<16x192xf32>
    %cst_23 = arith.constant 0.000000e+00 : f32
    %30 = vector.broadcast %cst_23 : f32 to vector<16x192xf32>
    %31 = arith.maximumf %29, %30 : vector<16x192xf32>
    %32 = arith.truncf %31 : vector<16x192xf32> to vector<16x192xbf16>
    %c0_24 = arith.constant 0 : index
    %c0_25 = arith.constant 0 : index
    %33 = vector.load %arg10[%c0_24, %c0_25] : memref<192x384xbf16, #tpu.memory_space<vmem>>, vector<192x384xbf16>
    %cst_26 = arith.constant dense<0.000000e+00> : vector<16x384xf32>
    %34 = tpu.matmul %32, %33, %cst_26 {dimension_numbers = #tpu.dot_dimension_numbers<[1], [0], [0], [1], [0, 0, 1, 1], [], []>} : vector<16x192xbf16>, vector<192x384xbf16>, vector<16x384xf32> -> vector<16x384xf32>
    %c0_27 = arith.constant 0 : index
    %c0_28 = arith.constant 0 : index
    %35 = vector.load %arg11[%c0_27, %c0_28] : memref<1x384xf32, #tpu.memory_space<vmem>>, vector<1x384xf32>
    %36 = vector.broadcast %35 : vector<1x384xf32> to vector<16x384xf32>
    %37 = arith.addf %34, %36 : vector<16x384xf32>
    %cst_29 = arith.constant 0.000000e+00 : f32
    %38 = vector.broadcast %cst_29 : f32 to vector<16x384xf32>
    %39 = arith.maximumf %37, %38 : vector<16x384xf32>
    %40 = arith.truncf %39 : vector<16x384xf32> to vector<16x384xbf16>
    %c0_30 = arith.constant 0 : index
    %c0_31 = arith.constant 0 : index
    %41 = vector.load %arg12[%c0_30, %c0_31] : memref<384x128xbf16, #tpu.memory_space<vmem>>, vector<384x128xbf16>
    %cst_32 = arith.constant dense<0.000000e+00> : vector<16x128xf32>
    %42 = tpu.matmul %40, %41, %cst_32 {dimension_numbers = #tpu.dot_dimension_numbers<[1], [0], [0], [1], [0, 0, 1, 1], [], []>} : vector<16x384xbf16>, vector<384x128xbf16>, vector<16x128xf32> -> vector<16x128xf32>
    %c0_33 = arith.constant 0 : index
    %c0_34 = arith.constant 0 : index
    %43 = vector.load %arg13[%c0_33, %c0_34] : memref<1x128xf32, #tpu.memory_space<vmem>>, vector<1x128xf32>
    %44 = vector.broadcast %43 : vector<1x128xf32> to vector<16x128xf32>
    %45 = arith.addf %42, %44 : vector<16x128xf32>
    %c0_35 = arith.constant 0 : index
    %c0_36 = arith.constant 0 : index
    %46 = vector.load %arg14[%c0_35, %c0_36] : memref<16x128xf32, #tpu.memory_space<vmem>>, vector<16x128xf32>
    tpu.vector_store %arg14[%c0_35, %c0_36], %45 {strides = array<i32>} : memref<16x128xf32, #tpu.memory_space<vmem>>, vector<16x128xf32>,
    return
  }
  func.func @transform_0(%arg0: i32) -> (i32, i32) {
    %c0_i32 = arith.constant 0 : i32
    %c0_i32_0 = arith.constant 0 : i32
    return %arg0, %c0_i32 : i32, i32
  }
  func.func @transform_1(%arg0: i32) -> (i32, i32) {
    %c0_i32 = arith.constant 0 : i32
    %c0_i32_0 = arith.constant 0 : i32
    %c0_i32_1 = arith.constant 0 : i32
    return %c0_i32, %c0_i32_0 : i32, i32
  }
  func.func @transform_2(%arg0: i32) -> (i32, i32) {
    %c0_i32 = arith.constant 0 : i32
    %c0_i32_0 = arith.constant 0 : i32
    %c0_i32_1 = arith.constant 0 : i32
    return %c0_i32, %c0_i32_0 : i32, i32
  }
  func.func @transform_3(%arg0: i32) -> (i32, i32) {
    %c0_i32 = arith.constant 0 : i32
    %c0_i32_0 = arith.constant 0 : i32
    %c0_i32_1 = arith.constant 0 : i32
    return %c0_i32, %c0_i32_0 : i32, i32
  }
  func.func @transform_4(%arg0: i32) -> (i32, i32) {
    %c0_i32 = arith.constant 0 : i32
    %c0_i32_0 = arith.constant 0 : i32
    %c0_i32_1 = arith.constant 0 : i32
    return %c0_i32, %c0_i32_0 : i32, i32
  }
  func.func @transform_5(%arg0: i32) -> (i32, i32) {
    %c0_i32 = arith.constant 0 : i32
    %c0_i32_0 = arith.constant 0 : i32
    %c0_i32_1 = arith.constant 0 : i32
    return %c0_i32, %c0_i32_0 : i32, i32
  }
  func.func @transform_6(%arg0: i32) -> (i32, i32) {
    %c0_i32 = arith.constant 0 : i32
    %c0_i32_0 = arith.constant 0 : i32
    %c0_i32_1 = arith.constant 0 : i32
    return %c0_i32, %c0_i32_0 : i32, i32
  }
  func.func @transform_7(%arg0: i32) -> (i32, i32) {
    %c0_i32 = arith.constant 0 : i32
    %c0_i32_0 = arith.constant 0 : i32
    %c0_i32_1 = arith.constant 0 : i32
    return %c0_i32, %c0_i32_0 : i32, i32
  }
  func.func @transform_8(%arg0: i32) -> (i32, i32) {
    %c0_i32 = arith.constant 0 : i32
    %c0_i32_0 = arith.constant 0 : i32
    %c0_i32_1 = arith.constant 0 : i32
    return %c0_i32, %c0_i32_0 : i32, i32
  }
  func.func @transform_9(%arg0: i32) -> (i32, i32) {
    %c0_i32 = arith.constant 0 : i32
    %c0_i32_0 = arith.constant 0 : i32
    %c0_i32_1 = arith.constant 0 : i32
    return %c0_i32, %c0_i32_0 : i32, i32
  }
  func.func @transform_10(%arg0: i32) -> (i32, i32) {
    %c0_i32 = arith.constant 0 : i32
    %c0_i32_0 = arith.constant 0 : i32
    %c0_i32_1 = arith.constant 0 : i32
    return %c0_i32, %c0_i32_0 : i32, i32
  }
  func.func @transform_11(%arg0: i32) -> (i32, i32) {
    %c0_i32 = arith.constant 0 : i32
    %c0_i32_0 = arith.constant 0 : i32
    %c0_i32_1 = arith.constant 0 : i32
    return %c0_i32, %c0_i32_0 : i32, i32
  }
  func.func @transform_12(%arg0: i32) -> (i32, i32) {
    %c0_i32 = arith.constant 0 : i32
    %c0_i32_0 = arith.constant 0 : i32
    %c0_i32_1 = arith.constant 0 : i32
    return %c0_i32, %c0_i32_0 : i32, i32
  }
  func.func @transform_13(%arg0: i32) -> (i32, i32) {
    %c0_i32 = arith.constant 0 : i32
    %c0_i32_0 = arith.constant 0 : i32
    return %arg0, %c0_i32 : i32, i32
  }
}

</mosaic_0001>

<bundles_post_ra>
// kernel: autoencoder_forward.1
= control target key start
LH: loop header
LB: loop body
LE: loop exit
PB: predicated region body
PF: predicated region fallthrough
CT: control target
= control target key end

     0   :  { %v2024_v2 = vmov 0   ;;  %vm129_vm0 = vcmask 392192   ;;  %v2025_v12 = vmov 0.0   ;;  %vm2026_vm1 = vmmov 0   ;;  %s2624_s0 = inlined_call_operand.vmem [shape: bf16[8,48], index: 0, kind: input, shape index: {}]   ;;  %s2625_s1 = inlined_call_operand.vmem [shape: bf16[48,384], index: 1, kind: input, shape index: {}]   ;;  %s2626_s2 = inlined_call_operand.vmem [shape: f32[1,384], index: 2, kind: input, shape index: {}]   ;;  %s2627_s3 = inlined_call_operand.vmem [shape: bf16[384,192], index: 3, kind: input, shape index: {}]   ;;  %s2628_s4 = inlined_call_operand.vmem [shape: f32[1,192], index: 4, kind: input, shape index: {}]   ;;  %s2629_s5 = inlined_call_operand.vmem [shape: bf16[192,128], index: 5, kind: input, shape index: {}]   ;;  %s2630_s6 = inlined_call_operand.vmem [shape: f32[1,128], index: 6, kind: input, shape index: {}]   ;;  %s2631_s7 = inlined_call_operand.vmem [shape: bf16[128,192], index: 7, kind: input, shape index: {}]   ;;  %s2632_s8 = inlined_call_operand.vmem [shape: f32[1,192], index: 8, kind: input, shape index: {}]   ;;  %s2633_s9 = inlined_call_operand.vmem [shape: bf16[192,384], index: 9, kind: input, shape index: {}]   ;;  %s2634_s10 = inlined_call_operand.vmem [shape: f32[1,384], index: 10, kind: input, shape index: {}]   ;;  %s2635_s11 = inlined_call_operand.vmem [shape: bf16[384,128], index: 11, kind: input, shape index: {}]   ;;  %s2636_s12 = inlined_call_operand.vmem [shape: f32[1,128], index: 12, kind: input, shape index: {}]   ;;  %s2637_s13 = inlined_call_operand.vmem [shape: f32[8,128], index: 13, kind: output, shape index: {}]  }
   0x1   :  { %v1831_v0 = vld [vmem:[%s2625_s1 + $0x4] ss:$12 sps:$4 sm:$0xff]   ;;  %v1833_v1 = vld [vmem:[%s2625_s1] ss:$12 sps:$4 sm:$0xff]   ;;  %165 = vmatprep.mubr.bf16.mxu1 %v2024_v2  ;;  %v1834_v3 = vld [vmem:[%s2625_s1 + $0x1c] ss:$12 sps:$4 sm:$0xff]   ;;  %v61_v54 = vlaneseq }
   0x2   :  { %133 = vmatprep.subr.bf16.mxu1 %v1831_v0  ;;  %v1836_v4 = vld [vmem:[%s2625_s1 + $0x18] ss:$12 sps:$4 sm:$0xff]   ;;  %v1837_v5 = vld [vmem:[%s2625_s1 + $0x34] ss:$12 sps:$4 sm:$0xff]   ;;  %v1839_v6 = vld [vmem:[%s2625_s1 + $0x30] ss:$12 sps:$4 sm:$0xff]  }
   0x3   :  { %134 = vmatpush1.bf16.msra.mxu1 %v1833_v1  ;;  %v1844_v7 = vld [vmem:[%s2627_s3 + $0x4] ss:$8 sps:$4 sm:$0xff]   ;;  %v1846_v8 = vld [vmem:[%s2627_s3] ss:$8 sps:$4 sm:$0xff]   ;;  %v1847_v10 = vld [vmem:[%s2627_s3 + $0x14] ss:$8 sps:$4 sm:$0xff]  }
   0x4   :  { %135 = vmatprep.subr.bf16.mxu1 %v1834_v3  ;;  %v1840_v9 = vld [vmem:[%s2624_s0] sm:$0xff]   ;;  %526 = vmatprep.subr.bf16.mxu0 %v1844_v7  ;;  %v1841_v11 = vld [vmem:[%s2625_s1 + $0x8] ss:$12 sps:$4 sm:$0xff]   ;;  %v1849_v13 = vld [vmem:[%s2627_s3 + $0x10] ss:$8 sps:$4 sm:$0xff]   ;;  %v2271_v55 = vshrl.u32 %v61_v54, 7 }
   0x5   :  { %527 = vmatpush1.bf16.msra.mxu0 %v1846_v8  ;;  %v1850_v14 = vld [vmem:[%s2627_s3 + $0x24] ss:$8 sps:$4 sm:$0xff]   ;;  %v1852_v16 = vld [vmem:[%s2627_s3 + $0x20] ss:$8 sps:$4 sm:$0xff]   ;;  %v1853_v17 = vld [vmem:[%s2627_s3 + $0x34] ss:$8 sps:$4 sm:$0xff]  }
   0x6   :  { %528 = vmatprep.subr.bf16.mxu0 %v1847_v10  ;;  %v1842_v15 = vld [vmem:[%s2625_s1 + $0x20] ss:$12 sps:$4 sm:$0xff]   ;;  %v1843_v18 = vld [vmem:[%s2625_s1 + $0x38] ss:$12 sps:$4 sm:$0xff]   ;;  %v1859_v22 = vld [vmem:[%s2627_s3 + $0x54] ss:$8 sps:$4 sm:$0xff]  }
   0x7   :  { %136 = vmatpush1.bf16.msra.mxu1 %v1836_v4  ;;  %v1855_v19 = vld [vmem:[%s2627_s3 + $0x30] ss:$8 sps:$4 sm:$0xff]   ;;  %v1856_v20 = vld [vmem:[%s2627_s3 + $0x44] ss:$8 sps:$4 sm:$0xff]   ;;  %v1858_v21 = vld [vmem:[%s2627_s3 + $0x40] ss:$8 sps:$4 sm:$0xff]  }
   0x8   :  { %137 = vmatprep.subr.bf16.mxu1 %v1837_v5  ;;  %v1861_v23 = vld [vmem:[%s2627_s3 + $0x50] ss:$8 sps:$4 sm:$0xff]   ;;  %v1862_v24 = vld [vmem:[%s2627_s3 + $0x64] ss:$8 sps:$4 sm:$0xff]   ;;  %v1864_v25 = vld [vmem:[%s2627_s3 + $0x60] ss:$8 sps:$4 sm:$0xff]  }
   0x9   :  { %529 = vmatpush1.bf16.msra.mxu0 %v1849_v13  ;;  %v1865_v26 = vld [vmem:[%s2627_s3 + $0x74] ss:$8 sps:$4 sm:$0xff]   ;;  %v1867_v27 = vld [vmem:[%s2627_s3 + $0x70] ss:$8 sps:$4 sm:$0xff]   ;;  %v1868_v28 = vld [vmem:[%s2627_s3 + $0x84] ss:$8 sps:$4 sm:$0xff]  }
   0xa   :  { %530 = vmatprep.subr.bf16.mxu0 %v1850_v14  ;;  %v1870_v29 = vld [vmem:[%s2627_s3 + $0x80] ss:$8 sps:$4 sm:$0xff]   ;;  %v1871_v30 = vld [vmem:[%s2627_s3 + $0x94] ss:$8 sps:$4 sm:$0xff]   ;;  %v1873_v31 = vld [vmem:[%s2627_s3 + $0x90] ss:$8 sps:$4 sm:$0xff]  }
   0xb   :  { %138 = vmatpush1.bf16.msra.mxu1 %v1839_v6  ;;  %v1874_v32 = vld [vmem:[%s2627_s3 + $0xa4] ss:$8 sps:$4 sm:$0xff]   ;;  %v1876_v33 = vld [vmem:[%s2627_s3 + $0xa0] ss:$8 sps:$4 sm:$0xff]   ;;  %v1877_v34 = vld [vmem:[%s2627_s3 + $0xb4] ss:$8 sps:$4 sm:$0xff]  }
   0xc   :  { %1790 = vmatprep.subr.bf16.mxu1 %v2025_v12  ;;  %v1879_v35 = vld [vmem:[%s2627_s3 + $0xb0] ss:$8 sps:$4 sm:$0xff]   ;;  %v1880_v36 = vld [vmem:[%s2627_s3 + $0xc4] ss:$8 sps:$4 sm:$0xff]   ;;  %v1882_v37 = vld [vmem:[%s2627_s3 + $0xc0] ss:$8 sps:$4 sm:$0xff]  }
   0xd   :  { %531 = vmatpush1.bf16.msra.mxu0 %v1852_v16  ;;  %v1883_v38 = vld [vmem:[%s2627_s3 + $0xd4] ss:$8 sps:$4 sm:$0xff]   ;;  %v1885_v39 = vld [vmem:[%s2627_s3 + $0xd0] ss:$8 sps:$4 sm:$0xff]   ;;  %v1886_v40 = vld [vmem:[%s2627_s3 + $0xe4] ss:$8 sps:$4 sm:$0xff]  }
   0xe   :  { %1612 = vmatmul.mubr.msk.bf16.vlgmr.msra.gmra.mrb[0].mxu1 %vm129_vm0, %v1840_v9  ;;  %532 = vmatprep.subr.bf16.mxu0 %v1853_v17  ;;  %v1888_v41 = vld [vmem:[%s2627_s3 + $0xe0] ss:$8 sps:$4 sm:$0xff]   ;;  %v1889_v42 = vld [vmem:[%s2627_s3 + $0xf4] ss:$8 sps:$4 sm:$0xff]   ;;  %v1891_v43 = vld [vmem:[%s2627_s3 + $0xf0] ss:$8 sps:$4 sm:$0xff]  }
   0xf   :  { %1791 = vmatpush3.bf16.msra.mxu1 %v1841_v11  ;;  %1796 = vmatprep.mubr.msk.bf16.mxu1 %vm2026_vm1, %v2025_v12  ;;  %v1894_v44 = vld [vmem:[%s2627_s3 + $0x104] ss:$8 sps:$4 sm:$0xff]   ;;  %v1918_v47 = vld [vmem:[%s2629_s5 + $0x10] sm:$0xff]   ;;  %v1919_v48 = vld [vmem:[%s2629_s5 + $0x18] sm:$0xff]   ;;  %v2274_v56 = vsub.s32 0, %v2271_v55  ;;  %v2280_v58 = vsub.s32 1, %v2271_v55 }
  0x10   :  { %1792 = vmatprep.subr.bf16.mxu1 %v2025_v12  ;;  %v1916_v45 = vld [vmem:[%s2629_s5] sm:$0xff]   ;;  %v1917_v46 = vld [vmem:[%s2629_s5 + $0x8] sm:$0xff]   ;;  %v1922_v51 = vld [vmem:[%s2629_s5 + $0x30] sm:$0xff]   ;;  %v71_v8 = vsub.s32 2, %v2271_v55  ;;  %vm721_vm2 = vcmask 523264  }
  0x11   :  { %533 = vmatpush1.bf16.msra.mxu0 %v1855_v19  ;;  %v1920_v49 = vld [vmem:[%s2629_s5 + $0x20] sm:$0xff]   ;;  %v1921_v50 = vld [vmem:[%s2629_s5 + $0x28] sm:$0xff]   ;;  %v1923_v52 = vld [vmem:[%s2629_s5 + $0x38] sm:$0xff]  }
  0x12   :  { %534 = vmatprep.subr.bf16.mxu0 %v1856_v20  ;;  %v1924_v53 = vld [vmem:[%s2629_s5 + $0x40] sm:$0xff]   ;;  %v1895_v17 = vld [vmem:[%s2627_s3 + $0x110] ss:$8 sps:$4 sm:$0xff]  }
  0x13   :  { %1793 = vmatpush3.bf16.msra.mxu1 %v1842_v15  ;;  %v59_v57 = vld [vmem:[%s2626_s2] sm:$0x7]  ;;  %v1897_v15 = vld [vmem:[%s2627_s3 + $0x114] ss:$8 sps:$4 sm:$0xff]   ;;  %v1900_v19 = vld [vmem:[%s2627_s3 + $0x124] ss:$8 sps:$4 sm:$0xff]  }
  0x14   :  { %1794 = vmatprep.subr.bf16.mxu1 %v2025_v12  ;;  %v64_v59 = vrot.slane %v59_v57, %v2274_v56  ;;  %v68_v60 = vrot.slane %v59_v57, %v2280_v58  ;;  %v1892_v14 = vld [vmem:[%s2627_s3 + $0x100] ss:$8 sps:$4 sm:$0xff]   ;;  %v72_v16 = vrot.slane %v59_v57, %v71_v8 }
  0x15   :  { %535 = vmatpush1.bf16.msra.mxu0 %v1858_v21 }
  0x16   :  { %536 = vmatprep.subr.bf16.mxu0 %v1859_v22 }
  0x17   :  { %1795 = vmatpush3.bf16.msra.mxu1 %v1843_v18 }
  0x18   :  { %725 = vmatprep.subr.bf16.mxu1 %v2024_v2 }
  0x19   :  { %537 = vmatpush1.bf16.msra.mxu0 %v1861_v23 }
  0x1a   :  { %1797 = vmatmul.mubr.msk.bf16.vlgmr.msra.gmra.mrb[4].mxu1 %vm129_vm0, %v1840_v9  ;;  %538 = vmatprep.subr.bf16.mxu0 %v1862_v24 }
  0x1b   :  { %726 = vmatpush1.bf16.msra.mxu1 %v1916_v45 }
  0x1c   :  { %727 = vmatprep.subr.bf16.mxu1 %v2024_v2 }
  0x1d   :  { %539 = vmatpush1.bf16.msra.mxu0 %v1864_v25 }
  0x1e   :  { %540 = vmatprep.subr.bf16.mxu0 %v1865_v26  ;;  %v1898_v26 = vld [vmem:[%s2627_s3 + $0x120] ss:$8 sps:$4 sm:$0xff]  }
  0x1f   :  { %728 = vmatpush1.bf16.msra.mxu1 %v1917_v46 }
  0x20   :  { %729 = vmatprep.subr.bf16.mxu1 %v2024_v2 }
  0x21   :  { %541 = vmatpush1.bf16.msra.mxu0 %v1867_v27  ;;  %v1903_v27 = vld [vmem:[%s2627_s3 + $0x134] ss:$8 sps:$4 sm:$0xff]  }
  0x22   :  { %542 = vmatprep.subr.bf16.mxu0 %v1868_v28 }
  0x23   :  { %730 = vmatpush1.bf16.msra.mxu1 %v1918_v47 }
  0x24   :  { %731 = vmatprep.subr.bf16.mxu1 %v2024_v2 }
  0x25   :  { %543 = vmatpush1.bf16.msra.mxu0 %v1870_v29 }
  0x26   :  { %544 = vmatprep.subr.bf16.mxu0 %v1871_v30  ;;  %v1901_v30 = vld [vmem:[%s2627_s3 + $0x130] ss:$8 sps:$4 sm:$0xff]  }
  0x27   :  { %732 = vmatpush1.bf16.msra.mxu1 %v1919_v48 }
  0x28   :  { %733 = vmatprep.subr.bf16.mxu1 %v2024_v2 }
  0x29   :  { %545 = vmatpush1.bf16.msra.mxu0 %v1873_v31  ;;  %v1906_v31 = vld [vmem:[%s2627_s3 + $0x144] ss:$8 sps:$4 sm:$0xff]  }
  0x2a   :  { %546 = vmatprep.subr.bf16.mxu0 %v1874_v32  ;;  %v1904_v32 = vld [vmem:[%s2627_s3 + $0x140] ss:$8 sps:$4 sm:$0xff]  }
  0x2b   :  { %734 = vmatpush1.bf16.msra.mxu1 %v1920_v49 }
  0x2c   :  { %735 = vmatprep.subr.bf16.mxu1 %v2024_v2 }
  0x2d   :  { %547 = vmatpush1.bf16.msra.mxu0 %v1876_v33  ;;  %v1909_v33 = vld [vmem:[%s2627_s3 + $0x154] ss:$8 sps:$4 sm:$0xff]  }
  0x2e   :  { %548 = vmatprep.subr.bf16.mxu0 %v1877_v34  ;;  %v1907_v34 = vld [vmem:[%s2627_s3 + $0x150] ss:$8 sps:$4 sm:$0xff]  }
  0x2f   :  { %736 = vmatpush1.bf16.msra.mxu1 %v1921_v50 }
  0x30   :  { %737 = vmatprep.subr.bf16.mxu1 %v2024_v2 }
  0x31   :  { %549 = vmatpush1.bf16.msra.mxu0 %v1879_v35  ;;  %v1912_v35 = vld [vmem:[%s2627_s3 + $0x164] ss:$8 sps:$4 sm:$0xff]  }
  0x32   :  { %550 = vmatprep.subr.bf16.mxu0 %v1880_v36  ;;  %v1910_v36 = vld [vmem:[%s2627_s3 + $0x160] ss:$8 sps:$4 sm:$0xff]  }
  0x33   :  { %738 = vmatpush1.bf16.msra.mxu1 %v1922_v51 }
  0x34   :  { %739 = vmatprep.subr.bf16.mxu1 %v2024_v2 }
  0x35   :  { %551 = vmatpush1.bf16.msra.mxu0 %v1882_v37  ;;  %v1915_v37 = vld [vmem:[%s2627_s3 + $0x174] ss:$8 sps:$4 sm:$0xff]  }
  0x36   :  { %552 = vmatprep.subr.bf16.mxu0 %v1883_v38  ;;  %v1913_v38 = vld [vmem:[%s2627_s3 + $0x170] ss:$8 sps:$4 sm:$0xff]  }
  0x37   :  { %740 = vmatpush1.bf16.msra.mxu1 %v1923_v52 }
  0x38   :  { %741 = vmatprep.subr.bf16.mxu1 %v2024_v2 }
  0x39   :  { %553 = vmatpush1.bf16.msra.mxu0 %v1885_v39  ;;  %v1925_v39 = vld [vmem:[%s2629_s5 + $0x48] sm:$0xff]  }
  0x3a   :  { %554 = vmatprep.subr.bf16.mxu0 %v1886_v40  ;;  %v1926_v40 = vld [vmem:[%s2629_s5 + $0x50] sm:$0xff]  }
  0x3b   :  { %742 = vmatpush1.bf16.msra.mxu1 %v1924_v53 }
  0x3c   :  { %743 = vmatprep.subr.bf16.mxu1 %v2024_v2 }
  0x3d   :  { %555 = vmatpush1.bf16.msra.mxu0 %v1888_v41  ;;  %v1927_v41 = vld [vmem:[%s2629_s5 + $0x58] sm:$0xff]  }
  0x3e   :  { %556 = vmatprep.subr.bf16.mxu0 %v1889_v42  ;;  %v1930_v42 = vld [vmem:[%s2631_s7 + $0x4] ss:$8 sps:$4 sm:$0xff]  }
  0x3f   :  { %744 = vmatpush1.bf16.msra.mxu1 %v1925_v39  ;;  %v1956_v39 = vld [vmem:[%s2633_s9 + $0x18] ss:$12 sps:$4 sm:$0xff]  }
  0x40   :  { %745 = vmatprep.subr.bf16.mxu1 %v2024_v2 }
  0x41   :  { %557 = vmatpush1.bf16.msra.mxu0 %v1891_v43  ;;  %v274_v43 = vld [vmem:[%s2628_s4] sm:$0x3] }
  0x42   :  { %569 = vmatprep.subr.bf16.mxu0 %v1894_v44  ;;  %v279_v44 = vrot.slane %v274_v43, %v2274_v56  ;;  %v283_v45 = vrot.slane %v274_v43, %v2280_v58  ;;  %v1964_v43 = vld [vmem:[%s2633_s9 + $0x48] ss:$12 sps:$4 sm:$0xff]  }
  0x43   :  { %746 = vmatpush1.bf16.msra.mxu1 %v1926_v40  ;;  %v1962_v40 = vld [vmem:[%s2633_s9 + $0x34] ss:$12 sps:$4 sm:$0xff]  }
  0x44   :  { %747 = vmatprep.subr.bf16.mxu1 %v2024_v2 }
  0x47   :  { %748 = vmatpush1.bf16.msra.mxu1 %v1927_v41  ;;  %v1960_v41 = vld [vmem:[%s2633_s9 + $0x30] ss:$12 sps:$4 sm:$0xff]  }
  0x48   :  { %877 = vmatprep.subr.bf16.mxu1 %v1930_v42  ;;  %v1966_v42 = vld [vmem:[%s2633_s9 + $0x4c] ss:$12 sps:$4 sm:$0xff]  }
  0xe1   :  { %v167_v61 = vpop.f32.mrb[0].mxu1 }
  0xe2   :  { %v168_v62 = vadd.f32 %v167_v61, %v64_v59  ;;  %v169_v63 = vpop.f32.mrb[1].mxu1 }
  0xe3   :  { %v170_v0 = vadd.f32 %v169_v63, %v68_v60  ;;  %v171_v1 = vpop.f32.mrb[2].mxu1  ;;  %v1928_v63 = vld [vmem:[%s2631_s7] ss:$8 sps:$4 sm:$0xff]  }
  0xe4   :  { %v172_v3 = vadd.f32 %v171_v1, %v64_v59  ;;  %v173_v4 = vpop.f32.mrb[3].mxu1  ;;  %v217_v6 = vmax.f32 %v168_v62, 0.0  ;;  %v1931_v1 = vld [vmem:[%s2631_s7 + $0x10] ss:$8 sps:$4 sm:$0xff]  }
  0xe5   :  { %v174_v5 = vadd.f32 %v173_v4, %v68_v60  ;;  %v218_v9 = vmax.f32 %v170_v0, 0.0  ;;  %v1933_v0 = vld [vmem:[%s2631_s7 + $0x14] ss:$8 sps:$4 sm:$0xff]   ;;  %v1934_v4 = vld [vmem:[%s2631_s7 + $0x20] ss:$8 sps:$4 sm:$0xff]  }
  0xe6   :  { %v220_v7 = vmax.f32 %v172_v3, 0.0  ;;  %v1936_v3 = vld [vmem:[%s2631_s7 + $0x24] ss:$8 sps:$4 sm:$0xff]  }
  0xe7   :  { %v221_v10 = vmax.f32 %v174_v5, 0.0  ;;  %v1939_v5 = vld [vmem:[%s2631_s7 + $0x34] ss:$8 sps:$4 sm:$0xff]  }
  0xe8   :  { %v223_v11 = vpack.c.bf16 %v220_v7, %v217_v6  ;;  %v1937_v6 = vld [vmem:[%s2631_s7 + $0x30] ss:$8 sps:$4 sm:$0xff]   ;;  %v1942_v7 = vld [vmem:[%s2631_s7 + $0x44] ss:$8 sps:$4 sm:$0xff]  }
  0xe9   :  { %v224_v13 = vpack.c.bf16 %v221_v10, %v218_v9  ;;  %v1940_v9 = vld [vmem:[%s2631_s7 + $0x40] ss:$8 sps:$4 sm:$0xff]   ;;  %v1945_v10 = vld [vmem:[%s2631_s7 + $0x54] ss:$8 sps:$4 sm:$0xff]  }
  0xeb   :  { %558 = vmatprep.mubr.bf16.mxu0 %v224_v13  ;;  %v1948_v13 = vld [vmem:[%s2631_s7 + $0x64] ss:$8 sps:$4 sm:$0xff]  }
  0xec   :  { %559 = vmatmul.mubr.bf16.vlgmr.msra.gmra.mrb[0].mxu0 %v223_v11  ;;  %v1943_v11 = vld [vmem:[%s2631_s7 + $0x50] ss:$8 sps:$4 sm:$0xff]  }
  0xed   :  { %570 = vmatpush1.bf16.msra.mxu0 %v1892_v14  ;;  %v210_v18 = vpop.f32.mrb[4].mxu1  ;;  %601 = vmatprep.mubr.bf16.mxu0 %v2024_v2  ;;  %v1946_v14 = vld [vmem:[%s2631_s7 + $0x60] ss:$8 sps:$4 sm:$0xff]  }
  0xee   :  { %571 = vmatprep.subr.bf16.mxu0 %v1897_v15  ;;  %v211_v20 = vadd.f32 %v210_v18, %v72_v16  ;;  %v1798_v21 = vpop.f32.mrb[5].mxu1  ;;  %v1951_v15 = vld [vmem:[%s2631_s7 + $0x74] ss:$8 sps:$4 sm:$0xff]  }
  0xef   :  { %v213_v22 = vpop.f32.mrb[6].mxu1  ;;  %v1955_v18 = vld [vmem:[%s2633_s9 + $0x8] ss:$12 sps:$4 sm:$0xff]   ;;  %v1967_v21 = vld [vmem:[%s2633_s9 + $0x50] ss:$12 sps:$4 sm:$0xff]  }
  0xf0   :  { %v219_v23 = vmax.f32 %v211_v20, 0.0  ;;  %v214_v24 = vadd.f32 %v213_v22, %v72_v16  ;;  %v1799_v25 = vpop.f32.mrb[7].mxu1  ;;  %v1949_v16 = vld [vmem:[%s2631_s7 + $0x70] ss:$8 sps:$4 sm:$0xff]   ;;  %v1971_v22 = vld [vmem:[%s2633_s9 + $0x68] ss:$12 sps:$4 sm:$0xff]  }
  0xf1   :  { %572 = vmatpush1.bf16.msra.mxu0 %v1895_v17  ;;  %v1954_v17 = vld [vmem:[%s2633_s9 + $0x4] ss:$12 sps:$4 sm:$0xff]  }
  0xf2   :  { %573 = vmatprep.subr.bf16.mxu0 %v1900_v19  ;;  %v222_v28 = vmax.f32 %v214_v24, 0.0  ;;  %v1959_v19 = vld [vmem:[%s2633_s9 + $0x20] ss:$12 sps:$4 sm:$0xff]   ;;  %v1963_v20 = vld [vmem:[%s2633_s9 + $0x38] ss:$12 sps:$4 sm:$0xff]  }
  0xf3   :  { %v1979_v24 = vld [vmem:[%s2633_s9 + $0x98] ss:$12 sps:$4 sm:$0xff]   ;;  %v1983_v25 = vld [vmem:[%s2633_s9 + $0xb0] ss:$12 sps:$4 sm:$0xff]  }
  0xf4   :  { %v225_v29 = vpack.c.bf16 %v222_v28, %v219_v23  ;;  %v1975_v23 = vld [vmem:[%s2633_s9 + $0x80] ss:$12 sps:$4 sm:$0xff]  }
  0xf5   :  { %574 = vmatpush1.bf16.msra.mxu0 %v1898_v26  ;;  %v1987_v26 = vld [vmem:[%s2633_s9 + $0xc8] ss:$12 sps:$4 sm:$0xff]  }
  0xf6   :  { %575 = vmatprep.subr.bf16.mxu0 %v1903_v27  ;;  %v1662_v27 = vld [vmem:[%s2630_s6] ss:$0 sm:$0xff] }
  0xf9   :  { %576 = vmatpush1.bf16.msra.mxu0 %v1901_v30 }
  0xfa   :  { %577 = vmatprep.subr.bf16.mxu0 %v1906_v31 }
  0xfd   :  { %578 = vmatpush1.bf16.msra.mxu0 %v1904_v32 }
  0xfe   :  { %579 = vmatprep.subr.bf16.mxu0 %v1909_v33 }
 0x101   :  { %580 = vmatpush1.bf16.msra.mxu0 %v1907_v34 }
 0x102   :  { %581 = vmatprep.subr.bf16.mxu0 %v1912_v35 }
 0x105   :  { %582 = vmatpush1.bf16.msra.mxu0 %v1910_v36  ;;  %v1952_v36 = vld [vmem:[%s2633_s9] ss:$12 sps:$4 sm:$0xff]  }
 0x106   :  { %583 = vmatprep.subr.bf16.mxu0 %v1915_v37 }
 0x109   :  { %584 = vmatpush1.bf16.msra.mxu0 %v1913_v38  ;;  %v1958_v38 = vld [vmem:[%s2633_s9 + $0x1c] ss:$12 sps:$4 sm:$0xff]  }
 0x10a   :  { %1229 = vmatprep.subr.bf16.mxu0 %v2024_v2 }
 0x10c   :  { %602 = vmatmul.mubr.bf16.vlgmr.msra.gmra.mrb[0].mxu0 %v225_v29 }
 0x10d   :  { %1230 = vmatpush1.bf16.msra.mxu0 %v1955_v18 }
 0x10e   :  { %1231 = vmatprep.subr.bf16.mxu0 %v2024_v2 }
 0x111   :  { %1232 = vmatpush1.bf16.msra.mxu0 %v1959_v19 }
 0x112   :  { %1233 = vmatprep.subr.bf16.mxu0 %v2024_v2 }
 0x115   :  { %1234 = vmatpush1.bf16.msra.mxu0 %v1963_v20 }
 0x116   :  { %1235 = vmatprep.subr.bf16.mxu0 %v2024_v2 }
 0x119   :  { %1236 = vmatpush1.bf16.msra.mxu0 %v1967_v21 }
 0x11a   :  { %1237 = vmatprep.subr.bf16.mxu0 %v2024_v2 }
 0x11d   :  { %1238 = vmatpush1.bf16.msra.mxu0 %v1971_v22  ;;  %v2000_v22 = vld [vmem:[%s2635_s11 + $0x80] sm:$0xff]  }
 0x11e   :  { %1239 = vmatprep.subr.bf16.mxu0 %v2024_v2 }
 0x121   :  { %1240 = vmatpush1.bf16.msra.mxu0 %v1975_v23  ;;  %v2002_v23 = vld [vmem:[%s2635_s11] sm:$0xff]  }
 0x122   :  { %1241 = vmatprep.subr.bf16.mxu0 %v2024_v2 }
 0x125   :  { %1242 = vmatpush1.bf16.msra.mxu0 %v1979_v24  ;;  %v2004_v24 = vld [vmem:[%s2635_s11 + $0x48] sm:$0xff]  }
 0x126   :  { %1243 = vmatprep.subr.bf16.mxu0 %v2024_v2 }
 0x129   :  { %1244 = vmatpush1.bf16.msra.mxu0 %v1983_v25  ;;  %v2003_v25 = vld [vmem:[%s2635_s11 + $0x88] sm:$0xff]  }
 0x12a   :  { %1245 = vmatprep.subr.bf16.mxu0 %v2024_v2 }
 0x12d   :  { %1246 = vmatpush1.bf16.msra.mxu0 %v1987_v26  ;;  %v2005_v26 = vld [vmem:[%s2635_s11 + $0x8] sm:$0xff]  }
 0x12e   :  { %1247 = vmatprep.subr.bf16.mxu0 %v2024_v2 }
 0x1df   :  { %v603_v46 = vpop.f32.mrb[0].mxu0 }
 0x1e0   :  { %v1820_v47 = vadd.f32 %v603_v46, %v279_v44  ;;  %v605_v48 = vpop.f32.mrb[1].mxu0  ;;  %v1974_v46 = vld [vmem:[%s2633_s9 + $0x7c] ss:$12 sps:$4 sm:$0xff]  }
 0x1e1   :  { %v1821_v49 = vadd.f32 %v605_v48, %v283_v45  ;;  %v607_v50 = vpop.f32.mrb[2].mxu0  ;;  %v1978_v48 = vld [vmem:[%s2633_s9 + $0x94] ss:$12 sps:$4 sm:$0xff]  }
 0x1e2   :  { %v1822_v51 = vadd.f32 %v607_v50, %v279_v44  ;;  %v609_v52 = vpop.f32.mrb[3].mxu0  ;;  %v612_v54 = vmax.f32 %v1820_v47, 0.0  ;;  %v1970_v44 = vld [vmem:[%s2633_s9 + $0x64] ss:$12 sps:$4 sm:$0xff]   ;;  %v1982_v50 = vld [vmem:[%s2633_s9 + $0xac] ss:$12 sps:$4 sm:$0xff]  }
 0x1e3   :  { %v1823_v53 = vadd.f32 %v609_v52, %v283_v45  ;;  %v613_v59 = vmax.f32 %v1821_v49, 0.0  ;;  %v1968_v45 = vld [vmem:[%s2633_s9 + $0x60] ss:$12 sps:$4 sm:$0xff]   ;;  %v1972_v47 = vld [vmem:[%s2633_s9 + $0x78] ss:$12 sps:$4 sm:$0xff]  }
 0x1e4   :  { %v614_v57 = vmax.f32 %v1822_v51, 0.0  ;;  %v1976_v49 = vld [vmem:[%s2633_s9 + $0x90] ss:$12 sps:$4 sm:$0xff]   ;;  %v1980_v51 = vld [vmem:[%s2633_s9 + $0xa8] ss:$12 sps:$4 sm:$0xff]  }
 0x1e5   :  { %v615_v60 = vmax.f32 %v1823_v53, 0.0  ;;  %v1986_v52 = vld [vmem:[%s2633_s9 + $0xc4] ss:$12 sps:$4 sm:$0xff]   ;;  %v1984_v53 = vld [vmem:[%s2633_s9 + $0xc0] ss:$12 sps:$4 sm:$0xff]  }
 0x1e6   :  { %v616_v61 = vpack.c.bf16 %v614_v57, %v612_v54  ;;  %v1990_v54 = vld [vmem:[%s2633_s9 + $0xdc] ss:$12 sps:$4 sm:$0xff]   ;;  %v1988_v57 = vld [vmem:[%s2633_s9 + $0xd8] ss:$12 sps:$4 sm:$0xff]  }
 0x1e7   :  { %v617_v62 = vpack.c.bf16 %v615_v60, %v613_v59  ;;  %v1991_v59 = vld [vmem:[%s2633_s9 + $0xe0] ss:$12 sps:$4 sm:$0xff]  }
 0x1e8   :  { %1248 = vmatpush1.bf16.msra.mxu0 %v1991_v59  ;;  %v1994_v60 = vld [vmem:[%s2633_s9 + $0xf4] ss:$12 sps:$4 sm:$0xff]  }
 0x1e9   :  { %1675 = vmatprep.mubr.msk.bf16.mxu1 %vm721_vm2, %v617_v62  ;;  %1249 = vmatprep.subr.bf16.mxu0 %v2024_v2  ;;  %v1995_v62 = vld [vmem:[%s2633_s9 + $0xf8] ss:$12 sps:$4 sm:$0xff]  }
 0x1ea   :  { %758 = vmatmul.mubr.bf16.vlgmr.msra.gmra.mrb[8].mxu1 %v616_v61  ;;  %v1992_v61 = vld [vmem:[%s2633_s9 + $0xf0] ss:$12 sps:$4 sm:$0xff]  }
 0x1eb   :  { %878 = vmatpush1.bf16.msra.mxu1 %v1928_v63  ;;  %909 = vmatprep.mubr.bf16.mxu1 %v2024_v2  ;;  %v1998_v63 = vld [vmem:[%s2633_s9 + $0x10c] ss:$12 sps:$4 sm:$0xff]  }
 0x1ec   :  { %879 = vmatprep.subr.bf16.mxu1 %v1933_v0  ;;  %1250 = vmatpush1.bf16.msra.mxu0 %v1995_v62  ;;  %v1996_v0 = vld [vmem:[%s2633_s9 + $0x108] ss:$12 sps:$4 sm:$0xff]  }
 0x1ed   :  { %1251 = vmatprep.subr.bf16.mxu0 %v2024_v2  ;;  %v785_v2 = vld [vmem:[%s2632_s8] sm:$0x3] }
 0x1ef   :  { %880 = vmatpush1.bf16.msra.mxu1 %v1931_v1  ;;  %v1999_v1 = vld [vmem:[%s2633_s9 + $0x110] ss:$12 sps:$4 sm:$0xff]  }
 0x1f0   :  { %881 = vmatprep.subr.bf16.mxu1 %v1936_v3  ;;  %1252 = vmatpush1.bf16.msra.mxu0 %v1999_v1  ;;  %v2001_v3 = vld [vmem:[%s2635_s11 + $0x40] sm:$0xff]  }
 0x1f1   :  { %1800 = vmatprep.subr.bf16.mxu0 %v2025_v12 }
 0x1f3   :  { %882 = vmatpush1.bf16.msra.mxu1 %v1934_v4  ;;  %v790_v4 = vrot.slane %v785_v2, %v2274_v56 }
 0x1f4   :  { %883 = vmatprep.subr.bf16.mxu1 %v1939_v5  ;;  %v794_v5 = vrot.slane %v785_v2, %v2280_v58 }
 0x1f7   :  { %884 = vmatpush1.bf16.msra.mxu1 %v1937_v6 }
 0x1f8   :  { %885 = vmatprep.subr.bf16.mxu1 %v1942_v7 }
 0x1fb   :  { %886 = vmatpush1.bf16.msra.mxu1 %v1940_v9 }
 0x1fc   :  { %887 = vmatprep.subr.bf16.mxu1 %v1945_v10 }
 0x1ff   :  { %888 = vmatpush1.bf16.msra.mxu1 %v1943_v11 }
 0x200   :  { %889 = vmatprep.subr.bf16.mxu1 %v1948_v13 }
 0x203   :  { %890 = vmatpush1.bf16.msra.mxu1 %v1946_v14 }
 0x204   :  { %891 = vmatprep.subr.bf16.mxu1 %v1951_v15 }
 0x207   :  { %892 = vmatpush1.bf16.msra.mxu1 %v1949_v16 }
 0x208   :  { %1186 = vmatprep.subr.bf16.mxu1 %v1954_v17 }
 0x2bd   :  { %v759_v28 = vpop.f32.mrb[8].mxu1 }
 0x2be   :  { %v760_v29 = vadd.f32 %v1662_v27, %v759_v28  ;;  %v761_v30 = vpop.f32.mrb[9].mxu1  ;;  %v2006_v28 = vld [vmem:[%s2635_s11 + $0x90] sm:$0xff]  }
 0x2bf   :  { %v762_v31 = vpop.f32.mrb[10].mxu1  ;;  %v2010_v30 = vld [vmem:[%s2635_s11 + $0x58] sm:$0xff]  }
 0x2c0   :  { %v763_v32 = vadd.f32 %v1662_v27, %v762_v31  ;;  %v764_v33 = vpop.f32.mrb[11].mxu1  ;;  %v766_v34 = vmax.f32 %v760_v29, 0.0  ;;  %v2007_v27 = vld [vmem:[%s2635_s11 + $0x50] sm:$0xff]   ;;  %v2009_v31 = vld [vmem:[%s2635_s11 + $0x98] sm:$0xff]  }
 0x2c1   :  { %v2008_v29 = vld [vmem:[%s2635_s11 + $0x10] sm:$0xff]   ;;  %v2013_v33 = vld [vmem:[%s2635_s11 + $0x60] sm:$0xff]  }
 0x2c2   :  { %v767_v35 = vmax.f32 %v763_v32, 0.0  ;;  %v2011_v32 = vld [vmem:[%s2635_s11 + $0x18] sm:$0xff]  }
 0x2c4   :  { %v768_v37 = vpack.c.bf16 %v767_v35, %v766_v34  ;;  %v2012_v34 = vld [vmem:[%s2635_s11 + $0xa0] sm:$0xff]  }
 0x2c5   :  { %v2014_v35 = vld [vmem:[%s2635_s11 + $0x20] sm:$0xff]  }
 0x2c6   :  { %910 = vmatmul.mubr.bf16.vlgmr.msra.gmra.mrb[12].mxu1 %v768_v37  ;;  %v2015_v37 = vld [vmem:[%s2635_s11 + $0xa8] sm:$0xff]  }
 0x2c7   :  { %1187 = vmatpush1.bf16.msra.mxu1 %v1952_v36  ;;  %v2016_v36 = vld [vmem:[%s2635_s11 + $0x68] sm:$0xff]  }
 0x2c8   :  { %1188 = vmatprep.subr.bf16.mxu1 %v1958_v38  ;;  %v2017_v38 = vld [vmem:[%s2635_s11 + $0x28] sm:$0xff]  }
 0x2cb   :  { %1189 = vmatpush1.bf16.msra.mxu1 %v1956_v39  ;;  %v2018_v39 = vld [vmem:[%s2635_s11 + $0xb0] sm:$0xff]  }
 0x2cc   :  { %1190 = vmatprep.subr.bf16.mxu1 %v1962_v40  ;;  %v2019_v40 = vld [vmem:[%s2635_s11 + $0x70] sm:$0xff]  }
 0x2cf   :  { %1191 = vmatpush1.bf16.msra.mxu1 %v1960_v41  ;;  %v2020_v41 = vld [vmem:[%s2635_s11 + $0x30] sm:$0xff]  }
 0x2d0   :  { %1192 = vmatprep.subr.bf16.mxu1 %v1966_v42  ;;  %v2021_v42 = vld [vmem:[%s2635_s11 + $0xb8] sm:$0xff]  }
 0x2d3   :  { %1193 = vmatpush1.bf16.msra.mxu1 %v1964_v43  ;;  %v2022_v43 = vld [vmem:[%s2635_s11 + $0x78] sm:$0xff]  }
 0x2d4   :  { %1194 = vmatprep.subr.bf16.mxu1 %v1970_v44  ;;  %v2023_v44 = vld [vmem:[%s2635_s11 + $0x38] sm:$0xff]  }
 0x2d7   :  { %1195 = vmatpush1.bf16.msra.mxu1 %v1968_v45 }
 0x2d8   :  { %1196 = vmatprep.subr.bf16.mxu1 %v1974_v46 }
 0x2db   :  { %1197 = vmatpush1.bf16.msra.mxu1 %v1972_v47 }
 0x2dc   :  { %1198 = vmatprep.subr.bf16.mxu1 %v1978_v48 }
 0x2df   :  { %1199 = vmatpush1.bf16.msra.mxu1 %v1976_v49 }
 0x2e0   :  { %1200 = vmatprep.subr.bf16.mxu1 %v1982_v50 }
 0x2e3   :  { %1201 = vmatpush1.bf16.msra.mxu1 %v1980_v51 }
 0x2e4   :  { %1202 = vmatprep.subr.bf16.mxu1 %v1986_v52 }
 0x2e7   :  { %1203 = vmatpush1.bf16.msra.mxu1 %v1984_v53 }
 0x2e8   :  { %1204 = vmatprep.subr.bf16.mxu1 %v1990_v54 }
 0x2eb   :  { %1205 = vmatpush1.bf16.msra.mxu1 %v1988_v57 }
 0x2ec   :  { %1206 = vmatprep.subr.bf16.mxu1 %v1994_v60 }
 0x2ef   :  { %1207 = vmatpush1.bf16.msra.mxu1 %v1992_v61 }
 0x2f0   :  { %1208 = vmatprep.subr.bf16.mxu1 %v1998_v63 }
 0x2f3   :  { %1209 = vmatpush1.bf16.msra.mxu1 %v1996_v0 }
 0x2f4   :  { %1759 = vmatprep.subr.bf16.mxu1 %v2001_v3 }
 0x399   :  { %v911_v6 = vpop.f32.mrb[12].mxu1 }
 0x39a   :  { %v912_v7 = vadd.f32 %v911_v6, %v790_v4  ;;  %v913_v9 = vpop.f32.mrb[13].mxu1 }
 0x39b   :  { %v914_v10 = vadd.f32 %v913_v9, %v794_v5  ;;  %v915_v11 = vpop.f32.mrb[14].mxu1 }
 0x39c   :  { %v916_v13 = vadd.f32 %v915_v11, %v790_v4  ;;  %v917_v14 = vpop.f32.mrb[15].mxu1  ;;  %v920_v16 = vmax.f32 %v912_v7, 0.0  ;;  %v1730_v11 = vld [vmem:[%s2636_s12] ss:$0 sm:$0xff] }
 0x39d   :  { %v918_v15 = vadd.f32 %v917_v14, %v794_v5  ;;  %v921_v18 = vmax.f32 %v914_v10, 0.0 }
 0x39e   :  { %v922_v17 = vmax.f32 %v916_v13, 0.0 }
 0x39f   :  { %v923_v19 = vmax.f32 %v918_v15, 0.0 }
 0x3a0   :  { %v924_v20 = vpack.c.bf16 %v922_v17, %v920_v16 }
 0x3a1   :  { %v925_v21 = vpack.c.bf16 %v923_v19, %v921_v18 }
 0x3a3   :  { %1728 = vmatprep.mubr.msk.bf16.mxu1 %vm721_vm2, %v925_v21  ;;  %1729 = vmatprep.mubr.msk.bf16.mxu0 %vm721_vm2, %v925_v21 }
 0x3a4   :  { %1219 = vmatmul.mubr.bf16.vlgmr.msra.gmra.mrb[16].mxu1 %v924_v20  ;;  %1262 = vmatmul.mubr.bf16.vlgmr.msra.gmra.mrb[4].mxu0 %v924_v20 }
 0x3a5   :  { %1801 = vmatpush3.bf16.msra.mxu0 %v2000_v22  ;;  %1760 = vmatpush3.bf16.msra.mxu1 %v2002_v23 }
 0x3a6   :  { %1802 = vmatprep.subr.bf16.mxu0 %v2025_v12  ;;  %1761 = vmatprep.subr.bf16.mxu1 %v2004_v24 }
 0x3a7   :  { %1816 = vmatprep.mubr.msk.bf16.mxu0 %vm2026_vm1, %v2025_v12 }
 0x3a9   :  { %1803 = vmatpush3.bf16.msra.mxu0 %v2003_v25  ;;  %1762 = vmatpush3.bf16.msra.mxu1 %v2005_v26 }
 0x3aa   :  { %1804 = vmatprep.subr.bf16.mxu0 %v2025_v12  ;;  %1763 = vmatprep.subr.bf16.mxu1 %v2007_v27 }
 0x3ad   :  { %1805 = vmatpush3.bf16.msra.mxu0 %v2006_v28  ;;  %1764 = vmatpush3.bf16.msra.mxu1 %v2008_v29 }
 0x3ae   :  { %1806 = vmatprep.subr.bf16.mxu0 %v2025_v12  ;;  %1765 = vmatprep.subr.bf16.mxu1 %v2010_v30 }
 0x3b1   :  { %1807 = vmatpush3.bf16.msra.mxu0 %v2009_v31  ;;  %1766 = vmatpush3.bf16.msra.mxu1 %v2011_v32 }
 0x3b2   :  { %1808 = vmatprep.subr.bf16.mxu0 %v2025_v12  ;;  %1767 = vmatprep.subr.bf16.mxu1 %v2013_v33 }
 0x3b5   :  { %1809 = vmatpush3.bf16.msra.mxu0 %v2012_v34  ;;  %1768 = vmatpush3.bf16.msra.mxu1 %v2014_v35 }
 0x3b6   :  { %1810 = vmatprep.subr.bf16.mxu0 %v2025_v12  ;;  %1769 = vmatprep.subr.bf16.mxu1 %v2016_v36 }
 0x3b9   :  { %1811 = vmatpush3.bf16.msra.mxu0 %v2015_v37  ;;  %1770 = vmatpush3.bf16.msra.mxu1 %v2017_v38 }
 0x3ba   :  { %1812 = vmatprep.subr.bf16.mxu0 %v2025_v12  ;;  %1771 = vmatprep.subr.bf16.mxu1 %v2019_v40 }
 0x3bd   :  { %1813 = vmatpush3.bf16.msra.mxu0 %v2018_v39  ;;  %1772 = vmatpush3.bf16.msra.mxu1 %v2020_v41 }
 0x3be   :  { %1814 = vmatprep.subr.bf16.mxu0 %v2025_v12  ;;  %1773 = vmatprep.subr.bf16.mxu1 %v2022_v43  ;;  %v974_v12 = vld [vmem:[%s2634_s10] sm:$0x7] }
 0x3bf   :  { %v979_v45 = vrot.slane %v974_v12, %v2274_v56  ;;  %v987_v46 = vrot.slane %v974_v12, %v71_v8  ;;  %v983_v47 = vrot.slane %v974_v12, %v2280_v58 }
 0x3c1   :  { %1815 = vmatpush3.bf16.msra.mxu0 %v2021_v42  ;;  %1774 = vmatpush3.bf16.msra.mxu1 %v2023_v44 }
 0x477   :  { %v1220_v48 = vpop.f32.mrb[16].mxu1  ;;  %v1263_v49 = vpop.f32.mrb[4].mxu0 }
 0x478   :  { %v1221_v50 = vadd.f32 %v1220_v48, %v979_v45  ;;  %v1264_v51 = vadd.f32 %v1263_v49, %v987_v46  ;;  %v1222_v52 = vpop.f32.mrb[17].mxu1  ;;  %v1265_v53 = vpop.f32.mrb[5].mxu0 }
 0x479   :  { %v1223_v54 = vadd.f32 %v1222_v52, %v983_v47  ;;  %v1224_v57 = vpop.f32.mrb[18].mxu1  ;;  %v1266_v59 = vpop.f32.mrb[6].mxu0 }
 0x47a   :  { %v1225_v60 = vadd.f32 %v1224_v57, %v979_v45  ;;  %v1267_v61 = vadd.f32 %v1266_v59, %v987_v46  ;;  %v1226_v62 = vpop.f32.mrb[19].mxu1  ;;  %v1268_v63 = vpop.f32.mrb[7].mxu0  ;;  %v1270_v56 = vmax.f32 %v1221_v50, 0.0  ;;  %v1272_v1 = vmax.f32 %v1264_v51, 0.0 }
 0x47b   :  { %v1227_v0 = vadd.f32 %v1226_v62, %v983_v47  ;;  %v1271_v3 = vmax.f32 %v1223_v54, 0.0 }
 0x47c   :  { %v1273_v55 = vmax.f32 %v1225_v60, 0.0  ;;  %v1275_v8 = vmax.f32 %v1267_v61, 0.0 }
 0x47d   :  { %v1274_v58 = vmax.f32 %v1227_v0, 0.0 }
 0x47e   :  { %v1276_v2 = vpack.c.bf16 %v1273_v55, %v1270_v56  ;;  %v1278_v4 = vpack.c.bf16 %v1275_v8, %v1272_v1 }
 0x47f   :  { %v1277_v5 = vpack.c.bf16 %v1274_v58, %v1271_v3 }
 0x480   :  { %1817 = vmatmul.mubr.bf16.vlgmr.msra.gmra.mrb[8].mxu0 %v1278_v4 }
 0x481   :  { %1510 = vmatprep.mubr.bf16.mxu1 %v1277_v5 }
 0x482   :  { %1511 = vmatmul.mubr.bf16.vlgmr.msra.gmra.mrb[20].mxu1 %v1276_v2 }
 0x553   :  { %v1553_v6 = vpop.f32.mrb[8].mxu0 }
 0x554   :  { %v1818_v7 = vpop.f32.mrb[9].mxu0 }
 0x555   :  { %v1775_v9 = vpop.f32.mrb[20].mxu1  ;;  %v1556_v10 = vpop.f32.mrb[10].mxu0 }
 0x556   :  { %v1776_v13 = vpop.f32.mrb[21].mxu1  ;;  %v1819_v14 = vpop.f32.mrb[11].mxu0 }
 0x557   :  { %v1777_v15 = vadd.f32 %v1776_v13, %v1775_v9  ;;  %v1778_v16 = vpop.f32.mrb[22].mxu1 }
 0x558   :  { %v1779_v17 = vpop.f32.mrb[23].mxu1 }
 0x559   :  { %v1513_v18 = vadd.f32 %v1777_v15, %v1730_v11 }
 0x55b   :  { %v1554_v19 = vadd.f32 %v1553_v6, %v1513_v18 }
 0x55d   :  { %1592 = vst [vmem:[%s2637_s13] sm:$0xff] %v1554_v19 }

</bundles_post_ra>
